<compile_context>
chip_gen: v5e
topology: v5e:2x2
jax: 0.10.0
libtpu: 0.0.40
codegen_flags: <defaults>
</compile_context>

<pallas_src>
import functools

import jax
import jax.numpy as jnp
from jax import lax
from jax.experimental import pallas as pl
from jax.experimental.pallas import tpu as pltpu


def _round_up(x, m):
    return ((x + m - 1) // m) * m


def _pose_topk_gather_kernel(srow_ref, scol_ref, boxes_ref, rawsc_ref, joints_ref,
                             boxes_out_ref, scores_out_ref, joints_out_ref):
    """One grid step handles `bt` images.

    srow_ref   : (bt, 1, Npad)  f32  masked scores, row layout   (pad lanes = -1e30)
    scol_ref   : (bt, Npad, 1)  f32  masked scores, column layout (bit-identical)
    boxes_ref  : (bt, Npad, 4)  f32  raw boxes
    rawsc_ref  : (bt, Npad, 1)  f32  raw scores
    joints_ref : (bt, Npad, 3J) f32  raw joints (flattened)
    *_out_ref  : (bt, Kpad, .)  f32  gathered top-K payloads
    """
    bt = srow_ref.shape[0]
    npad = srow_ref.shape[2]
    kpad = boxes_out_ref.shape[1]

    # Hoisted, loop-invariant constants (shared by every image of this block).
    tie_lt = (lax.broadcasted_iota(jnp.int32, (npad, npad), 0)
              < lax.broadcasted_iota(jnp.int32, (npad, npad), 1))
    k_iota = lax.broadcasted_iota(jnp.int32, (kpad, npad), 0)
    ones_bf16 = jnp.ones((1, npad), jnp.bfloat16)

    def body(i, carry):
        row = srow_ref[i]                                   # (1, Npad)
        col = scol_ref[i]                                   # (Npad, 1)

        # Parallel rank with lowest-index tie-break (matches sorted top-k):
        #   rank[n] = #{m : s_m > s_n  or  (s_m == s_n and m < n)}
        beats = jnp.logical_or(col > row,
                               jnp.logical_and(col == row, tie_lt))   # (Npad, Npad)
        # 0/1 values are exact in bf16; f32 accumulation keeps the count exact.
        # (If this M=1 weight-push ever binds on the MXU, the drop-in alternative
        #  is a VPU sublane sum: jnp.sum(beats, axis=0, keepdims=True).)
        rank = jnp.dot(ones_bf16, beats.astype(jnp.bfloat16),
                       preferred_element_type=jnp.float32)            # (1, Npad)
        onehot = (rank.astype(jnp.int32) == k_iota).astype(jnp.float32)  # (Kpad, Npad)

        # One-hot gather of the raw payloads (exact: a single 1.0 per output row).
        boxes_out_ref[i] = jnp.dot(onehot, boxes_ref[i],
                                   preferred_element_type=jnp.float32)
        scores_out_ref[i] = jnp.dot(onehot, rawsc_ref[i],
                                    preferred_element_type=jnp.float32)
        joints_out_ref[i] = jnp.dot(onehot, joints_ref[i],
                                    preferred_element_type=jnp.float32)
        return carry

    lax.fori_loop(0, bt, body, 0)


def _vmem_estimate_bytes(bt, npad, kpad, num_joints):
    per_img_in = npad * (1 + 1 + 4 + 1 + 3 * num_joints) * 4
    per_img_out = kpad * (4 + 1 + 3 * num_joints) * 4
    # One image's temporaries (beats bool + bf16 copy, iotas, onehot); conservative.
    tmp = npad * npad * 14 + kpad * npad * 8
    return 2 * bt * (per_img_in + per_img_out) + tmp


def _choose_images_per_block(batch_size, npad, kpad, num_joints):
    cap = min(4, batch_size)
    if batch_size >= 2:
        cap = min(cap, batch_size // 2)          # keep >= 2 grid steps for megacore
    budget = 40 << 20
    cands = [d for d in range(1, max(cap, 1) + 1)
             if batch_size % d == 0
             and _vmem_estimate_bytes(d, npad, kpad, num_joints) <= budget]
    if not cands:
        return 1
    even = [d for d in cands if (batch_size // d) % 2 == 0]   # v7x: 2 TCs -> even steps
    return max(even) if even else max(cands)


def pose_nms_batched_result(pred_boxes, pred_scores, pred_joints, selected_indexes,
                            *, batch_size, num_pre_nms_predictions,
                            max_predictions_per_image, images_per_block=None):
    if max_predictions_per_image > num_pre_nms_predictions:
        raise ValueError("max_predictions_per_image must be <= num_pre_nms_predictions")

    B = batch_size
    N = num_pre_nms_predictions
    K = max_predictions_per_image
    J = pred_joints.shape[2]
    F_J = 3 * J
    npad = _round_up(N, 128)
    kpad = _round_up(K, 8)
    f32 = jnp.float32

    if images_per_block is None:
        bt = _choose_images_per_block(B, npad, kpad, J)
    else:
        bt = int(images_per_block)
        if bt < 1 or B % bt != 0:
            raise ValueError("images_per_block must divide batch_size")
    grid = (B // bt,)

    # ---- final_mask[b, n] = 1 iff prediction n of image b survived the NMS plugin.
    #      Grid-invariant, so compute it once here with an O(S) scatter.
    batch_ids = selected_indexes[:, 0].astype(jnp.int32)
    box_ids = selected_indexes[:, 2].astype(jnp.int32)
    valid = (batch_ids >= 0) & (batch_ids < B) & (box_ids >= 0) & (box_ids < N)
    flat_idx = jnp.where(valid, batch_ids * N + box_ids, B * N)      # invalid -> dump slot
    final_mask = (jnp.zeros((B * N + 1,), f32).at[flat_idx].set(1.0)[:B * N]
                  .reshape(B, N))

    # Masked scores used for the top-K ordering (torch: pred_scores[:,:,0] * final_mask).
    sft = pred_scores[:, :, 0].astype(f32) * final_mask              # (B, N)

    pad_n = npad - N
    if pad_n:
        # Padded lanes get -1e30 so they can never outrank a real (even zero) score.
        sft_p = jnp.pad(sft, ((0, 0), (0, pad_n)), constant_values=-1e30)
        boxes_p = jnp.pad(pred_boxes.astype(f32), ((0, 0), (0, pad_n), (0, 0)))
        rawsc_p = jnp.pad(pred_scores.astype(f32), ((0, 0), (0, pad_n), (0, 0)))
        joints_p = jnp.pad(pred_joints.reshape(B, N, F_J).astype(f32),
                           ((0, 0), (0, pad_n), (0, 0)))
    else:
        sft_p = sft
        boxes_p = pred_boxes.astype(f32)
        rawsc_p = pred_scores.astype(f32)
        joints_p = pred_joints.reshape(B, N, F_J).astype(f32)

    # Row and column layouts of the same array -> bit-identical values.
    srow = sft_p.reshape(B, 1, npad)
    scol = sft_p.reshape(B, npad, 1)

    vmem_limit = int(min(max(_vmem_estimate_bytes(bt, npad, kpad, J) * 3 // 2
                             + (4 << 20), 16 << 20), 48 << 20))

    grid_spec = pltpu.PrefetchScalarGridSpec(
        num_scalar_prefetch=0,
        grid=grid,
        in_specs=[
            pl.BlockSpec((bt, 1, npad), lambda g: (g, 0, 0)),
            pl.BlockSpec((bt, npad, 1), lambda g: (g, 0, 0)),
            pl.BlockSpec((bt, npad, 4), lambda g: (g, 0, 0)),
            pl.BlockSpec((bt, npad, 1), lambda g: (g, 0, 0)),
            pl.BlockSpec((bt, npad, F_J), lambda g: (g, 0, 0)),
        ],
        out_specs=[
            pl.BlockSpec((bt, kpad, 4), lambda g: (g, 0, 0)),
            pl.BlockSpec((bt, kpad, 1), lambda g: (g, 0, 0)),
            pl.BlockSpec((bt, kpad, F_J), lambda g: (g, 0, 0)),
        ],
    )
    boxes_out, scores_out, joints_out = pl.pallas_call(
        _pose_topk_gather_kernel,
        out_shape=(jax.ShapeDtypeStruct((B, kpad, 4), f32),
                   jax.ShapeDtypeStruct((B, kpad, 1), f32),
                   jax.ShapeDtypeStruct((B, kpad, F_J), f32)),
        grid_spec=grid_spec,
        compiler_params=pltpu.CompilerParams(
            dimension_semantics=("parallel",),
            vmem_limit_bytes=vmem_limit),
    )(srow, scol, boxes_p, rawsc_p, joints_p)

    final_boxes = boxes_out[:, :K, :]
    final_scores = scores_out[:, :K, 0]
    final_poses = joints_out[:, :K, :].reshape(B, K, J, 3)

    # num detections per image: tiny scalar reduction -> plain JAX (int32, not int64).
    counts = jnp.sum(
        (batch_ids[None, :] == jnp.arange(B, dtype=jnp.int32)[:, None]).astype(jnp.int32),
        axis=1, keepdims=True)
    num = jnp.minimum(counts, jnp.int32(K))

    return num, final_boxes, final_scores, final_poses


def _reference(pred_boxes, pred_scores, pred_joints, selected_indexes, B, N, K):
    """Pure-JAX mirror of the PyTorch forward (for validation)."""
    sel = jnp.concatenate(
        [jnp.array([[-1, -1, -1]], dtype=selected_indexes.dtype), selected_indexes],
        axis=0)
    batch_indexes = sel[:, 0]
    boxes_indexes = sel[:, 2]
    pre_mask = jnp.arange(N)[:, None] == boxes_indexes[None, :]
    bmask = jnp.arange(B)[:, None] == batch_indexes[None, :]
    final_mask = jnp.any(bmask[:, None, :] & pre_mask[None, :, :], axis=2)
    scores = pred_scores[:, :, 0]
    sft = scores * final_mask
    _, idxs = lax.top_k(sft, K)
    fb = jnp.take_along_axis(pred_boxes, idxs[:, :, None], axis=1)
    fs = jnp.take_along_axis(scores, idxs, axis=1)
    fp = jnp.take_along_axis(pred_joints, idxs[:, :, None, None], axis=1)
    npred = jnp.minimum(jnp.sum(bmask.astype(jnp.int32), axis=1, keepdims=True), K)
    return npred, fb, fs, fp


if __name__ == "__main__":
    B, N, K, J = 2, 64, 4, 5
    key = jax.random.PRNGKey(0)
    kb, ks, kj = jax.random.split(key, 3)
    pred_boxes = jax.random.uniform(kb, (B, N, 4), jnp.float32, 0.0, 100.0)
    pred_scores = jax.random.uniform(ks, (B, N, 1), jnp.float32, 0.01, 1.0)
    pred_joints = jax.random.uniform(kj, (B, N, J, 3), jnp.float32, 0.0, 100.0)
    # NMS plugin output rows: [batch_index, label_index, box_index]
    selected_indexes = jnp.array(
        [[0, 0, 3], [0, 0, 10], [0, 0, 27], [0, 0, 41], [0, 0, 55],
         [1, 0, 0], [1, 0, 7], [1, 0, 50], [1, 0, 63]], dtype=jnp.int32)

    outs = pose_nms_batched_result(
        pred_boxes, pred_scores, pred_joints, selected_indexes,
        batch_size=B, num_pre_nms_predictions=N, max_predictions_per_image=K)
    outs = jax.block_until_ready(outs)
    num, boxes_o, scores_o, poses_o = outs

    rnum, rboxes, rscores, rposes = _reference(
        pred_boxes, pred_scores, pred_joints, selected_indexes, B, N, K)

    assert num.shape == (B, 1) and boxes_o.shape == (B, K, 4)
    assert scores_o.shape == (B, K) and poses_o.shape == (B, K, J, 3)
    assert jnp.array_equal(num, rnum), (num, rnum)
    assert jnp.allclose(boxes_o, rboxes, rtol=1e-5, atol=1e-4), "boxes mismatch"
    assert jnp.allclose(scores_o, rscores, rtol=1e-5, atol=1e-6), "scores mismatch"
    assert jnp.allclose(poses_o, rposes, rtol=1e-5, atol=1e-4), "poses mismatch"

    # TODO(synk): torch.topk tie-ordering among equal (zero-score) padding rows is
    # implementation-defined; this kernel breaks ties toward the lowest index.
    print("KERNEL_OK")
</pallas_src>

<mosaic_0001>
module attributes {stable_mosaic.version = 11 : i64} {
  func.func @_pose_topk_gather_kernel(%arg0: i32, %arg1: memref<1x1x128xf32, #tpu.memory_space<vmem>>, %arg2: memref<1x128x1xf32, #tpu.memory_space<vmem>>, %arg3: memref<1x128x4xf32, #tpu.memory_space<vmem>>, %arg4: memref<1x128x1xf32, #tpu.memory_space<vmem>>, %arg5: memref<1x128x15xf32, #tpu.memory_space<vmem>>, %arg6: memref<1x8x4xf32, #tpu.memory_space<vmem>>, %arg7: memref<1x8x1xf32, #tpu.memory_space<vmem>>, %arg8: memref<1x8x15xf32, #tpu.memory_space<vmem>>) attributes {dimension_semantics = [#tpu.dimension_semantics<parallel>], iteration_bounds = array<i64: 2>, scalar_prefetch = 0 : i64, scratch_operands = 0 : i64, tpu.core_type = #tpu.core_type<tc>, window_params = [{transform_indices = @transform_0, window_bounds = array<i64: 1, 1, 128>}, {transform_indices = @transform_1, window_bounds = array<i64: 1, 128, 1>}, {transform_indices = @transform_2, window_bounds = array<i64: 1, 128, 4>}, {transform_indices = @transform_3, window_bounds = array<i64: 1, 128, 1>}, {transform_indices = @transform_4, window_bounds = array<i64: 1, 128, 15>}, {transform_indices = @transform_5, window_bounds = array<i64: 1, 8, 4>}, {transform_indices = @transform_6, window_bounds = array<i64: 1, 8, 1>}, {transform_indices = @transform_7, window_bounds = array<i64: 1, 8, 15>}]} {
    %0 = tpu.iota {dimensions = array<i32: 0>} : vector<128x128xi32>
    %1 = tpu.iota {dimensions = array<i32: 1>} : vector<128x128xi32>
    %2 = arith.cmpi slt, %0, %1 : vector<128x128xi32>
    %3 = tpu.iota {dimensions = array<i32: 0>} : vector<8x128xi32>
    %cst = arith.constant 1.000000e+00 : bf16
    %4 = vector.broadcast %cst : bf16 to vector<1x128xbf16>
    %c0_i32 = arith.constant 0 : i32
    %5 = arith.index_cast %c0_i32 : i32 to index
    %c0 = arith.constant 0 : index
    %c0_0 = arith.constant 0 : index
    %6 = vector.load %arg1[%5, %c0, %c0_0] : memref<1x1x128xf32, #tpu.memory_space<vmem>>, vector<1x1x128xf32>
    %7 = vector.shape_cast %6 : vector<1x1x128xf32> to vector<1x128xf32>
    %8 = arith.index_cast %c0_i32 : i32 to index
    %c0_1 = arith.constant 0 : index
    %c0_2 = arith.constant 0 : index
    %9 = vector.load %arg2[%8, %c0_1, %c0_2] : memref<1x128x1xf32, #tpu.memory_space<vmem>>, vector<1x128x1xf32>
    %10 = vector.shape_cast %9 : vector<1x128x1xf32> to vector<128x1xf32>
    %11 = vector.broadcast %10 : vector<128x1xf32> to vector<128x128xf32>
    %12 = vector.broadcast %7 : vector<1x128xf32> to vector<128x128xf32>
    %13 = arith.cmpf ogt, %11, %12 : vector<128x128xf32>
    %14 = vector.broadcast %10 : vector<128x1xf32> to vector<128x128xf32>
    %15 = vector.broadcast %7 : vector<1x128xf32> to vector<128x128xf32>
    %16 = arith.cmpf oeq, %14, %15 : vector<128x128xf32>
    %17 = arith.andi %16, %2 : vector<128x128xi1>
    %18 = arith.ori %13, %17 : vector<128x128xi1>
    %19 = arith.extui %18 : vector<128x128xi1> to vector<128x128xi32>
    %20 = arith.sitofp %19 : vector<128x128xi32> to vector<128x128xf32>
    %21 = arith.truncf %20 : vector<128x128xf32> to vector<128x128xbf16>
    %cst_3 = arith.constant dense<0.000000e+00> : vector<1x128xf32>
    %22 = tpu.matmul %4, %21, %cst_3 {dimension_numbers = #tpu.dot_dimension_numbers<[1], [0], [0], [1], [0, 0, 1, 1], [], []>} : vector<1x128xbf16>, vector<128x128xbf16>, vector<1x128xf32> -> vector<1x128xf32>
    %23 = arith.fptosi %22 : vector<1x128xf32> to vector<1x128xi32>
    %24 = vector.broadcast %23 : vector<1x128xi32> to vector<8x128xi32>
    %25 = arith.cmpi eq, %24, %3 : vector<8x128xi32>
    %26 = arith.extui %25 : vector<8x128xi1> to vector<8x128xi32>
    %27 = arith.sitofp %26 : vector<8x128xi32> to vector<8x128xf32>
    %28 = arith.index_cast %c0_i32 : i32 to index
    %c0_4 = arith.constant 0 : index
    %c0_5 = arith.constant 0 : index
    %29 = vector.load %arg3[%28, %c0_4, %c0_5] : memref<1x128x4xf32, #tpu.memory_space<vmem>>, vector<1x128x4xf32>
    %30 = vector.shape_cast %29 : vector<1x128x4xf32> to vector<128x4xf32>
    %cst_6 = arith.constant dense<0.000000e+00> : vector<8x4xf32>
    %31 = tpu.matmul %27, %30, %cst_6 {dimension_numbers = #tpu.dot_dimension_numbers<[1], [0], [0], [1], [0, 0, 1, 1], [], []>} : vector<8x128xf32>, vector<128x4xf32>, vector<8x4xf32> -> vector<8x4xf32>
    %32 = arith.index_cast %c0_i32 : i32 to index
    %c0_7 = arith.constant 0 : index
    %c0_8 = arith.constant 0 : index
    %33 = vector.load %arg6[%32, %c0_7, %c0_8] : memref<1x8x4xf32, #tpu.memory_space<vmem>>, vector<1x8x4xf32>
    %34 = vector.shape_cast %33 : vector<1x8x4xf32> to vector<8x4xf32>
    %35 = vector.shape_cast %31 : vector<8x4xf32> to vector<1x8x4xf32>
    tpu.vector_store %arg6[%32, %c0_7, %c0_8], %35 {strides = array<i32>} : memref<1x8x4xf32, #tpu.memory_space<vmem>>, vector<1x8x4xf32>,
    %36 = arith.index_cast %c0_i32 : i32 to index
    %c0_9 = arith.constant 0 : index
    %c0_10 = arith.constant 0 : index
    %37 = vector.load %arg4[%36, %c0_9, %c0_10] : memref<1x128x1xf32, #tpu.memory_space<vmem>>, vector<1x128x1xf32>
    %38 = vector.shape_cast %37 : vector<1x128x1xf32> to vector<128x1xf32>
    %cst_11 = arith.constant dense<0.000000e+00> : vector<8x1xf32>
    %39 = tpu.matmul %27, %38, %cst_11 {dimension_numbers = #tpu.dot_dimension_numbers<[1], [0], [0], [1], [0, 0, 1, 1], [], []>} : vector<8x128xf32>, vector<128x1xf32>, vector<8x1xf32> -> vector<8x1xf32>
    %40 = arith.index_cast %c0_i32 : i32 to index
    %c0_12 = arith.constant 0 : index
    %c0_13 = arith.constant 0 : index
    %41 = vector.load %arg7[%40, %c0_12, %c0_13] : memref<1x8x1xf32, #tpu.memory_space<vmem>>, vector<1x8x1xf32>
    %42 = vector.shape_cast %41 : vector<1x8x1xf32> to vector<8x1xf32>
    %43 = vector.shape_cast %39 : vector<8x1xf32> to vector<1x8x1xf32>
    tpu.vector_store %arg7[%40, %c0_12, %c0_13], %43 {strides = array<i32>} : memref<1x8x1xf32, #tpu.memory_space<vmem>>, vector<1x8x1xf32>,
    %44 = arith.index_cast %c0_i32 : i32 to index
    %c0_14 = arith.constant 0 : index
    %c0_15 = arith.constant 0 : index
    %45 = vector.load %arg5[%44, %c0_14, %c0_15] : memref<1x128x15xf32, #tpu.memory_space<vmem>>, vector<1x128x15xf32>
    %46 = vector.shape_cast %45 : vector<1x128x15xf32> to vector<128x15xf32>
    %cst_16 = arith.constant dense<0.000000e+00> : vector<8x15xf32>
    %47 = tpu.matmul %27, %46, %cst_16 {dimension_numbers = #tpu.dot_dimension_numbers<[1], [0], [0], [1], [0, 0, 1, 1], [], []>} : vector<8x128xf32>, vector<128x15xf32>, vector<8x15xf32> -> vector<8x15xf32>
    %48 = arith.index_cast %c0_i32 : i32 to index
    %c0_17 = arith.constant 0 : index
    %c0_18 = arith.constant 0 : index
    %49 = vector.load %arg8[%48, %c0_17, %c0_18] : memref<1x8x15xf32, #tpu.memory_space<vmem>>, vector<1x8x15xf32>
    %50 = vector.shape_cast %49 : vector<1x8x15xf32> to vector<8x15xf32>
    %51 = vector.shape_cast %47 : vector<8x15xf32> to vector<1x8x15xf32>
    tpu.vector_store %arg8[%48, %c0_17, %c0_18], %51 {strides = array<i32>} : memref<1x8x15xf32, #tpu.memory_space<vmem>>, vector<1x8x15xf32>,
    %c1_i32 = arith.constant 1 : i32
    return
  }
  func.func @transform_0(%arg0: i32) -> (i32, i32, i32) {
    %c0_i32 = arith.constant 0 : i32
    %c0_i32_0 = arith.constant 0 : i32
    %c0_i32_1 = arith.constant 0 : i32
    return %arg0, %c0_i32, %c0_i32_0 : i32, i32, i32
  }
  func.func @transform_1(%arg0: i32) -> (i32, i32, i32) {
    %c0_i32 = arith.constant 0 : i32
    %c0_i32_0 = arith.constant 0 : i32
    %c0_i32_1 = arith.constant 0 : i32
    return %arg0, %c0_i32, %c0_i32_0 : i32, i32, i32
  }
  func.func @transform_2(%arg0: i32) -> (i32, i32, i32) {
    %c0_i32 = arith.constant 0 : i32
    %c0_i32_0 = arith.constant 0 : i32
    %c0_i32_1 = arith.constant 0 : i32
    return %arg0, %c0_i32, %c0_i32_0 : i32, i32, i32
  }
  func.func @transform_3(%arg0: i32) -> (i32, i32, i32) {
    %c0_i32 = arith.constant 0 : i32
    %c0_i32_0 = arith.constant 0 : i32
    %c0_i32_1 = arith.constant 0 : i32
    return %arg0, %c0_i32, %c0_i32_0 : i32, i32, i32
  }
  func.func @transform_4(%arg0: i32) -> (i32, i32, i32) {
    %c0_i32 = arith.constant 0 : i32
    %c0_i32_0 = arith.constant 0 : i32
    %c0_i32_1 = arith.constant 0 : i32
    return %arg0, %c0_i32, %c0_i32_0 : i32, i32, i32
  }
  func.func @transform_5(%arg0: i32) -> (i32, i32, i32) {
    %c0_i32 = arith.constant 0 : i32
    %c0_i32_0 = arith.constant 0 : i32
    %c0_i32_1 = arith.constant 0 : i32
    return %arg0, %c0_i32, %c0_i32_0 : i32, i32, i32
  }
  func.func @transform_6(%arg0: i32) -> (i32, i32, i32) {
    %c0_i32 = arith.constant 0 : i32
    %c0_i32_0 = arith.constant 0 : i32
    %c0_i32_1 = arith.constant 0 : i32
    return %arg0, %c0_i32, %c0_i32_0 : i32, i32, i32
  }
  func.func @transform_7(%arg0: i32) -> (i32, i32, i32) {
    %c0_i32 = arith.constant 0 : i32
    %c0_i32_0 = arith.constant 0 : i32
    %c0_i32_1 = arith.constant 0 : i32
    return %arg0, %c0_i32, %c0_i32_0 : i32, i32, i32
  }
}

</mosaic_0001>

<bundles_post_ra>
// kernel: tpu_custom_call.1
= control target key start
LH: loop header
LB: loop body
LE: loop exit
PB: predicated region body
PF: predicated region fallthrough
CT: control target
= control target key end

     0   :  { %s1591_s0 = inlined_call_operand.vmem [shape: f32[2,1,128], index: 0, kind: input, shape index: {}]   ;;  %s1592_s1 = inlined_call_operand.vmem [shape: f32[2,128,1], index: 1, kind: input, shape index: {}]   ;;  %s1593_s2 = inlined_call_operand.vmem [shape: f32[2,128,4], index: 2, kind: input, shape index: {}]   ;;  %s1594_s3 = inlined_call_operand.vmem [shape: f32[2,128,1], index: 3, kind: input, shape index: {}]   ;;  %s1595_s4 = inlined_call_operand.vmem [shape: f32[2,128,15], index: 4, kind: input, shape index: {}]   ;;  %s1596_s5 = inlined_call_operand.vmem [shape: f32[2,8,4], index: 5, kind: output, shape index: {0}]   ;;  %s1597_s6 = inlined_call_operand.vmem [shape: f32[2,8,1], index: 6, kind: output, shape index: {1}]   ;;  %s1598_s7 = inlined_call_operand.hbm [shape: f32[2,8,15], index: 7, kind: output, shape index: {2}]  }
   0x1   :  { %1599 = sst [smem:[#allocation5_spill]] %s1591_s0 }
   0x2   :  { %1600 = sst [smem:[#allocation6_spill]] %s1592_s1 }
   0x3   :  { %13 = vsyncpa [#allocation3], 0 }
   0x4   :  { %15 = vsyncpa [#allocation3 + $0x1], 0  ;;  %s1145_s24 = smov 0   ;;  %s1147_s25 = smov 0  }
   0x5   :  { %s1149_s26 = smov 0   ;;  %s1151_s27 = smov 0  }
   0x6 LB: > { %s1166_s28 = sadd.s32 4294967295, %s1099_s27   ;;  %s926_s29 = sadd.s32 4294967294, %s1099_s27   ;;  %s1099_s27 = sphi %s1151_s27, %s1644_s27   ;;  %s1095_s26 = sphi %s1149_s26, %s1643_s26   ;;  %s1091_s25 = sphi %s1147_s25, %s1642_s25   ;;  %s1087_s24 = sphi %s1145_s24, %s1641_s24  }
   0x7   : > { %s1170_s30 = sadd.s32 1, %s1099_s27   ;;  %s210_s8 = sadd.s32 1, %s1095_s26 }
   0x8   : > { %s207_s9 = ssub.s32 %s1099_s27, %s1170_s30  ;;  %p220_p0 = scmp.ne.s32.totalorder %s1095_s26, %s1091_s25 }
   0x9   : > { %p208_p1 = scmp.eq.s32.totalorder %s207_s9, 0  ;;  %p221_p2 = scmp.eq.s32.totalorder %s1166_s28, 1 }
   0xa   : > { %p226_p3 = scmp.ne.s32.totalorder %s1091_s25, %s1087_s24  ;;  %p227_p4 = scmp.eq.s32.totalorder %s926_s29, 1 }
   0xb   : > { %s1181_s10 = scalar_select %p208_p1, %s1095_s26, %s210_s8  }
   0xc   : > { %p1183_p5 = por %p221_p2, %p220_p0  ;;  %p1187_p6 = por %p227_p4, %p226_p3 }
   0xd   : > { %p929_p7 = scmp.ge.s32.totalorder %s1099_s27, 1  ;;  %p283_p8 = scmp.lt.s32.totalorder %s1099_s27, 3 }
   0xf   : > { %p284_p9 = pnand %p929_p7, %p283_p8 }
  0x10   : > { %p341_p10 = scmp.lt.s32.totalorder (!%p284_p9), %s1166_s28, 1  ;;  %s1603_s0 = sld [smem:[#allocation5_spill]] (!%p284_p9) }
  0x11   : > { %287 = sbr.rel (%p284_p9) target bundleno = 459 (0x1cb), region = 40  ;;  %s1604_s1 = sld [smem:[#allocation6_spill]] (!%p284_p9) }
  0x12   : > { %s978_s22 = sshll.u32 (!%p284_p9), %s1166_s28, 3 }
  0x16   : > { %v1101_v0 = vmov 0   ;;  %s1195_s13 = scalar_select %p341_p10, %s1166_s28, 1  ;;  %v373_v18 = vlaneseq  ;;  %v1102_v43 = vmov 1.0|1.0  }
  0x17   : > { %1035 = vset.pattern.permute.xlu2 %v1101_v0  ;;  %1034 = vset.pattern.permute.xlu1 %v1101_v0 }
  0x18   : > { %1033 = vset.pattern.permute.xlu0 %v1101_v0  ;;  %s1198_s14 = sshll.u32 %s1195_s13, 7  ;;  %s343_s17 = scalar_lea.vmem %s1603_s0, %s1195_s13  ;;  %v1226_v19 = vshrl.u32 %v373_v18, 7  ;;  %v1236_v23 = vand.u32 127, %v373_v18  ;;  %v1104_v0 = vmov 1.0  }
  0x19   : > { %s1208_s20 = scalar_lea.vmem %s1604_s1, %s1198_s14  ;;  %v1234_v22 = vld [vmem:[%s343_s17] ss:$0 sm:$0xff]  ;;  %s1290_s8 = scalar_lea.vmem %s1593_s2, %s1198_s14 }
  0x1a   : > { %v423_v1 = vld [vmem:[%s1208_s20 + $0x70] sm:$0xff]  ;;  %v421_v2 = vld [vmem:[%s1208_s20 + $0x60] sm:$0xff]  ;;  %v424_v4 = vld [vmem:[%s1208_s20 + $0x78] sm:$0xff]  ;;  %v384_v20 = vadd.s32 80, %v1226_v19  ;;  %v385_v24 = vadd.s32 88, %v1226_v19  ;;  %v388_v27 = vadd.s32 112, %v1226_v19  ;;  %s1296_s16 = scalar_lea.vmem %s1594_s3, %s1198_s14  ;;  %s1302_s19 = scalar_lea.vmem %s1595_s4, %s1198_s14 }
  0x1b   : > { %v419_v3 = vld [vmem:[%s1208_s20 + $0x50] sm:$0xff]  ;;  %497 = vperm.xlu0 %1033, %v423_v1   ;;  %487 = vperm.xlu1 %1034, %v421_v2   ;;  %v422_v5 = vld [vmem:[%s1208_s20 + $0x68] sm:$0xff]  ;;  %v420_v6 = vld [vmem:[%s1208_s20 + $0x58] sm:$0xff]  ;;  %v386_v28 = vadd.s32 96, %v1226_v19  ;;  %v387_v30 = vadd.s32 104, %v1226_v19  ;;  %v389_v32 = vadd.s32 120, %v1226_v19 }
  0x1c   : > { %477 = vperm.xlu2 %1035, %v419_v3   ;;  %v418_v7 = vld [vmem:[%s1208_s20 + $0x48] sm:$0xff]  ;;  %v417_v8 = vld [vmem:[%s1208_s20 + $0x40] sm:$0xff]  ;;  %v415_v9 = vld [vmem:[%s1208_s20 + $0x30] sm:$0xff]  ;;  %vm402_vm0 = vcmp.lt.s32.totalorder %v384_v20, %v1236_v23  ;;  %vm403_vm4 = vcmp.lt.s32.totalorder %v385_v24, %v1236_v23  ;;  %vm406_vm7 = vcmp.lt.s32.totalorder %v388_v27, %v1236_v23  ;;  %v383_v37 = vadd.s32 72, %v1226_v19  ;;  %s338_s14 = sand.u32 1, %s1091_s25   ;;  %s1057_s0 = scalar_lea.hbm %s1598_s7, 16 }
  0x1d   : > { %v416_v10 = vld [vmem:[%s1208_s20 + $0x38] sm:$0xff]  ;;  %v413_v11 = vld [vmem:[%s1208_s20 + $0x20] sm:$0xff]  ;;  %v414_v12 = vld [vmem:[%s1208_s20 + $0x28] sm:$0xff]  ;;  %vm404_vm8 = vcmp.lt.s32.totalorder %v386_v28, %v1236_v23  ;;  %v380_v39 = vadd.s32 48, %v1226_v19  ;;  %v382_v41 = vadd.s32 64, %v1226_v19  ;;  %v379_v49 = vadd.s32 40, %v1226_v19 }
  0x1e   : > { %v412_v13 = vld [vmem:[%s1208_s20 + $0x18] sm:$0xff]  ;;  %v411_v14 = vld [vmem:[%s1208_s20 + $0x10] sm:$0xff]  ;;  %v409_v15 = vld [vmem:[%s1208_s20] sm:$0xff]  ;;  %v381_v55 = vadd.s32 56, %v1226_v19  ;;  %v378_v59 = vadd.s32 32, %v1226_v19  ;;  %v376_v20 = vadd.s32 16, %v1226_v19 }
  0x1f   : > { %v410_v16 = vld [vmem:[%s1208_s20 + $0x8] sm:$0xff]  ;;  %v645_v47 = vld [vmem:[%s1290_s8 + $0x78] sm:$0xff]  ;;  %v644_v51 = vld [vmem:[%s1290_s8 + $0x70] sm:$0xff]  ;;  %s939_s20 = sshll.u32 %s1195_s13, 3  ;;  %s930_s21 = sshll.u32 %s338_s14, 3 }
  0x20   : > { %v683_v48 = vld [vmem:[%s1296_s16 + $0x78] sm:$0xff]  ;;  %646 = vmatpush.msra.mxu1 %v645_v47  ;;  %v682_v53 = vld [vmem:[%s1296_s16 + $0x70] sm:$0xff]  ;;  %v643_v56 = vld [vmem:[%s1290_s8 + $0x68] sm:$0xff]  ;;  %s340_s17 = scalar_lea.vmem [#allocation2], %s930_s21  ;;  %s371_s13 = scalar_lea.vmem %s1597_s6, %s939_s20 }
  0x21   : > { %v721_v50 = vld [vmem:[%s1302_s19 + $0x78] sm:$0xff]  ;;  %684 = vmatpush.msra.mxu2 %v683_v48  ;;  %v720_v54 = vld [vmem:[%s1302_s19 + $0x70] sm:$0xff]  ;;  %v681_v57 = vld [vmem:[%s1296_s16 + $0x68] sm:$0xff]  ;;  %s771_s18 = sshll.u32 %s340_s17, 4  ;;  %s753_s28 = scalar_lea.sflag [#allocation3], %s338_s14  ;;  %s772_s18 = int_to_ptr.vmem [resolvable:$true] %s771_s18 }
  0x22   : > { %722 = vmatpush.msra.mxu3 %v721_v50  ;;  %647 = vmatpush.msra.mxu1 %v644_v51  ;;  %v719_v60 = vld [vmem:[%s1302_s19 + $0x68] sm:$0xff]  ;;  %v642_v61 = vld [vmem:[%s1290_s8 + $0x60] sm:$0xff]  ;;  %v641_v3 = vld [vmem:[%s1290_s8 + $0x58] sm:$0xff] }
  0x23   : > { %502 = vperm.xlu0 %1033, %v424_v4   ;;  %492 = vperm.xlu1 %1034, %v422_v5   ;;  %v680_v63 = vld [vmem:[%s1296_s16 + $0x60] sm:$0xff]  ;;  %v679_v4 = vld [vmem:[%s1296_s16 + $0x58] sm:$0xff]  ;;  %v715_v18 = vld [vmem:[%s1302_s19 + $0x48] sm:$0xff] }
  0x24   : > { %482 = vperm.xlu2 %1035, %v420_v6   ;;  %685 = vmatpush.msra.mxu2 %v682_v53  ;;  %v718_v1 = vld [vmem:[%s1302_s19 + $0x60] sm:$0xff]  ;;  %v637_v28 = vld [vmem:[%s1290_s8 + $0x38] sm:$0xff]  ;;  %v674_v35 = vld [vmem:[%s1296_s16 + $0x30] sm:$0xff] }
  0x25   : > { %723 = vmatpush.msra.mxu3 %v720_v54  ;;  %648 = vmatpush.msra.mxu1 %v643_v56  ;;  %v714_v27 = vld [vmem:[%s1302_s19 + $0x40] sm:$0xff]  ;;  %v712_v38 = vld [vmem:[%s1302_s19 + $0x30] sm:$0xff]  ;;  %v673_v40 = vld [vmem:[%s1296_s16 + $0x28] sm:$0xff] }
  0x26   : > { %686 = vmatpush.msra.mxu2 %v681_v57  ;;  %v710_v46 = vld [vmem:[%s1302_s19 + $0x20] sm:$0xff]  ;;  %v633_v47 = vld [vmem:[%s1290_s8 + $0x18] sm:$0xff]  ;;  %v708_v50 = vld [vmem:[%s1302_s19 + $0x10] sm:$0xff] }
  0x27   : > { %724 = vmatpush.msra.mxu3 %v719_v60  ;;  %649 = vmatpush.msra.mxu1 %v642_v61  ;;  %v709_v48 = vld [vmem:[%s1302_s19 + $0x18] sm:$0xff]  ;;  %v631_v51 = vld [vmem:[%s1290_s8 + $0x8] sm:$0xff]  ;;  %v630_v54 = vld [vmem:[%s1290_s8] sm:$0xff] }
  0x28   : > { %687 = vmatpush.msra.mxu2 %v680_v63  ;;  %v669_v52 = vld [vmem:[%s1296_s16 + $0x8] sm:$0xff]  ;;  %v706_v56 = vld [vmem:[%s1302_s19] sm:$0xff] }
  0x29   : > { %725 = vmatpush.msra.mxu3 %v718_v1  ;;  %650 = vmatpush.msra.mxu1 %v641_v3  ;;  %v707_v53 = vld [vmem:[%s1302_s19 + $0x8] sm:$0xff] }
  0x2a   : > { %688 = vmatpush.msra.mxu2 %v679_v4 }
  0x2b   : > { %472 = vperm.xlu1 %1034, %v418_v7   ;;  %467 = vperm.xlu0 %1033, %v417_v8   ;;  %v717_v8 = vld [vmem:[%s1302_s19 + $0x58] sm:$0xff] }
  0x2c   : > { %457 = vperm.xlu2 %1035, %v415_v9   ;;  %v640_v9 = vld [vmem:[%s1290_s8 + $0x50] sm:$0xff]  ;;  %726 = vmatpush.msra.mxu3 %v717_v8 }
  0x2d   : > { %651 = vmatpush.msra.mxu1 %v640_v9 }
  0x33   : > { %462 = vperm.xlu0 %1033, %v416_v10   ;;  %447 = vperm.xlu1 %1034, %v413_v11   ;;  %v678_v11 = vld [vmem:[%s1296_s16 + $0x50] sm:$0xff] }
  0x34   : > { %452 = vperm.xlu2 %1035, %v414_v12   ;;  %v716_v12 = vld [vmem:[%s1302_s19 + $0x50] sm:$0xff]  ;;  %689 = vmatpush.msra.mxu2 %v678_v11 }
  0x35   : > { %727 = vmatpush.msra.mxu3 %v716_v12 }
  0x37   : > { %728 = vmatpush.msra.mxu3 %v715_v18 }
  0x39   : > { %729 = vmatpush.msra.mxu3 %v714_v27 }
  0x3b   : > { %442 = vperm.xlu1 %1034, %v412_v13   ;;  %437 = vperm.xlu0 %1033, %v411_v14   ;;  %v377_v14 = vadd.s32 24, %v1226_v19 }
  0x3c   : > { %427 = vperm.xlu2 %1035, %v409_v15   ;;  %v639_v15 = vld [vmem:[%s1290_s8 + $0x48] sm:$0xff] }
  0x3d   : > { %652 = vmatpush.msra.mxu1 %v639_v15 }
  0x43   : > { %432 = vperm.xlu0 %1033, %v410_v16  }
  0x76   : > { %v478_v17 = vpop.permute.xlu2 %477 }
  0x77   : > { %vm534_vm1 = vcmp.eq.f32.partialorder %v478_v17, %v1234_v22  ;;  %vm518_vm2 = vcmp.gt.f32.partialorder %v478_v17, %v1234_v22  ;;  %v677_v17 = vld [vmem:[%s1296_s16 + $0x48] sm:$0xff] }
  0x78   : > { %vm550_vm3 = vmand %vm534_vm1, %vm402_vm0  ;;  %vm405_vm1 = vcmp.lt.s32.totalorder %v387_v30, %v1236_v23  ;;  %690 = vmatpush.msra.mxu2 %v677_v17 }
  0x79   : > { %vm1253_vm10 = vmor %vm518_vm2, %vm550_vm3 }
  0x7e   : > { %v483_v21 = vpop.permute.xlu2 %482 }
  0x7f   : > { %vm535_vm5 = vcmp.eq.f32.partialorder %v483_v21, %v1234_v22  ;;  %vm519_vm11 = vcmp.gt.f32.partialorder %v483_v21, %v1234_v22  ;;  %v638_v21 = vld [vmem:[%s1290_s8 + $0x40] sm:$0xff] }
  0x80   : > { %vm551_vm12 = vmand %vm535_vm5, %vm403_vm4  ;;  %vm407_vm5 = vcmp.lt.s32.totalorder %v389_v32, %v1236_v23  ;;  %653 = vmatpush.msra.mxu1 %v638_v21  ;;  %v675_v32 = vld [vmem:[%s1296_s16 + $0x38] sm:$0xff] }
  0x81   : > { %vm1263_vm3 = vmor %vm519_vm11, %vm551_vm12 }
  0x82   : > { %654 = vmatpush.msra.mxu1 %v637_v28 }
  0x86   : > { %v1248_v29 = vpop.permute.xlu2 %457 }
  0x8d   : > { %v498_v25 = vpop.permute.xlu0 %497  ;;  %v488_v26 = vpop.permute.xlu1 %487 }
  0x8e   : > { %vm538_vm6 = vcmp.eq.f32.partialorder %v498_v25, %v1234_v22  ;;  %vm536_vm9 = vcmp.eq.f32.partialorder %v488_v26, %v1234_v22  ;;  %vm522_vm13 = vcmp.gt.f32.partialorder %v498_v25, %v1234_v22  ;;  %vm520_vm15 = vcmp.gt.f32.partialorder %v488_v26, %v1234_v22  ;;  %v1304_v42 = vpop.permute.xlu2 %452  ;;  %v676_v25 = vld [vmem:[%s1296_s16 + $0x40] sm:$0xff] }
  0x8f   : > { %vm554_vm14 = vmand %vm538_vm6, %vm406_vm7  ;;  %691 = vmatpush.msra.mxu2 %v676_v25 }
  0x90   : > { %vm552_vm0 = vmand %vm536_vm9, %vm404_vm8 }
  0x91   : > { %vm1269_vm6 = vmor %vm522_vm13, %vm554_vm14  ;;  %692 = vmatpush.msra.mxu2 %v675_v32 }
  0x92   : > { %vm1275_vm8 = vmor %vm520_vm15, %vm552_vm0  ;;  %vm401_vm15 = vcmp.lt.s32.totalorder %v383_v37, %v1236_v23  ;;  %v375_v37 = vadd.s32 8, %v1226_v19 }
  0x93   : > { %vm961_vm0 = vmpackc.low %vm1263_vm3, %vm1253_vm10  ;;  %693 = vmatpush.msra.mxu2 %v674_v35 }
  0x95   : > { %v503_v33 = vpop.permute.xlu0 %502  ;;  %v493_v34 = vpop.permute.xlu1 %492  ;;  %694 = vmatpush.msra.mxu2 %v673_v40 }
  0x96   : > { %vm537_vm2 = vcmp.eq.f32.partialorder %v493_v34, %v1234_v22  ;;  %vm539_vm4 = vcmp.eq.f32.partialorder %v503_v33, %v1234_v22  ;;  %vm523_vm7 = vcmp.gt.f32.partialorder %v503_v33, %v1234_v22  ;;  %vm521_vm11 = vcmp.gt.f32.partialorder %v493_v34, %v1234_v22  ;;  %v1425_v10 = vpop.permute.xlu2 %427  ;;  %v713_v33 = vld [vmem:[%s1302_s19 + $0x38] sm:$0xff]  ;;  %v636_v34 = vld [vmem:[%s1290_s8 + $0x30] sm:$0xff] }
  0x97   : > { %vm1280_vm9 = vmand %vm537_vm2, %vm405_vm1  ;;  %vm398_vm1 = vcmp.lt.s32.totalorder %v380_v39, %v1236_v23  ;;  %vm400_vm2 = vcmp.lt.s32.totalorder %v382_v41, %v1236_v23  ;;  %730 = vmatpush.msra.mxu3 %v713_v33  ;;  %v635_v39 = vld [vmem:[%s1290_s8 + $0x28] sm:$0xff]  ;;  %655 = vmatpush.msra.mxu1 %v636_v34 }
  0x98   : > { %vm555_vm12 = vmand %vm539_vm4, %vm407_vm5  ;;  %vm530_vm5 = vcmp.eq.f32.partialorder %v1248_v29, %v1234_v22  ;;  %v711_v41 = vld [vmem:[%s1302_s19 + $0x28] sm:$0xff] }
  0x99   : > { %vm571_vm13 = vmor %vm523_vm7, %vm555_vm12  ;;  %731 = vmatpush.msra.mxu3 %v712_v38  ;;  %656 = vmatpush.msra.mxu1 %v635_v39 }
  0x9a   : > { %vm957_vm14 = vmpackc.low %vm571_vm13, %vm1269_vm6 }
  0x9b   : > { %958 = vmatpush.bf16.msk.msra.mxu0 %vm957_vm14, %v1102_v43  ;;  %vm1320_vm4 = vmor %vm521_vm11, %vm1280_vm9  ;;  %732 = vmatpush.msra.mxu3 %v711_v41 }
  0x9c   : > { %vm959_vm9 = vmpackc.low %vm1320_vm4, %vm1275_vm8  ;;  %vm399_vm4 = vcmp.lt.s32.totalorder %v381_v55, %v1236_v23  ;;  %v668_v55 = vld [vmem:[%s1296_s16] sm:$0xff] }
  0x9d   : > { %v473_v44 = vpop.permute.xlu1 %472  ;;  %v468_v45 = vpop.permute.xlu0 %467  ;;  %733 = vmatpush.msra.mxu3 %v710_v46 }
  0x9e   : > { %vm533_vm6 = vcmp.eq.f32.partialorder %v473_v44, %v1234_v22  ;;  %vm532_vm7 = vcmp.eq.f32.partialorder %v468_v45, %v1234_v22  ;;  %vm516_vm12 = vcmp.gt.f32.partialorder %v468_v45, %v1234_v22  ;;  %vm517_vm13 = vcmp.gt.f32.partialorder %v473_v44, %v1234_v22  ;;  %v634_v44 = vld [vmem:[%s1290_s8 + $0x20] sm:$0xff] }
  0x9f   : > { %vm1339_vm11 = vmand %vm533_vm6, %vm401_vm15  ;;  %vm514_vm15 = vcmp.gt.f32.partialorder %v1248_v29, %v1234_v22  ;;  %960 = vmatpush.bf16.msk.msra.mxu0 %vm959_vm9, %v1102_v43  ;;  %v672_v45 = vld [vmem:[%s1296_s16 + $0x20] sm:$0xff]  ;;  %657 = vmatpush.msra.mxu1 %v634_v44 }
  0xa0   : > { %vm548_vm14 = vmand %vm532_vm7, %vm400_vm2  ;;  %vm397_vm2 = vcmp.lt.s32.totalorder %v379_v49, %v1236_v23  ;;  %695 = vmatpush.msra.mxu2 %v672_v45  ;;  %v632_v49 = vld [vmem:[%s1290_s8 + $0x10] sm:$0xff]  ;;  %734 = vmatpush.msra.mxu3 %v709_v48  ;;  %s367_s8 = scalar_lea.vmem %s1596_s5, %s939_s20 }
  0xa1   : > { %vm1359_vm6 = vmand %vm530_vm5, %vm398_vm1  ;;  %vm529_vm1 = vcmp.eq.f32.partialorder %v1304_v42, %v1234_v22  ;;  %658 = vmatpush.msra.mxu1 %v633_v47 }
  0xa2   : > { %vm1377_vm5 = vmor %vm516_vm12, %vm548_vm14  ;;  %735 = vmatpush.msra.mxu3 %v708_v50 }
  0xa3   : > { %vm1386_vm8 = vmor %vm517_vm13, %vm1339_vm11  ;;  %962 = vmatpush.bf16.msk.msra.mxu0 %vm961_vm0, %v1102_v43  ;;  %vm396_vm11 = vcmp.lt.s32.totalorder %v378_v59, %v1236_v23  ;;  %659 = vmatpush.msra.mxu1 %v632_v49 }
  0xa4   : > { %vm1397_vm7 = vmor %vm514_vm15, %vm1359_vm6  ;;  %vm513_vm6 = vcmp.gt.f32.partialorder %v1304_v42, %v1234_v22  ;;  %736 = vmatpush.msra.mxu3 %v707_v53 }
  0xa5   : > { %vm1405_vm9 = vmand %vm529_vm1, %vm397_vm2  ;;  %v463_v6 = vpop.permute.xlu0 %462  ;;  %v448_v7 = vpop.permute.xlu1 %447  ;;  %vm392_vm1 = vcmp.lt.s32.totalorder %v1226_v19, %v1236_v23  ;;  %660 = vmatpush.msra.mxu1 %v631_v51 }
  0xa6   : > { %vm515_vm12 = vcmp.gt.f32.partialorder %v463_v6, %v1234_v22  ;;  %vm531_vm13 = vcmp.eq.f32.partialorder %v463_v6, %v1234_v22  ;;  %vm528_vm14 = vcmp.eq.f32.partialorder %v448_v7, %v1234_v22  ;;  %vm963_vm10 = vmpackc.low %vm1386_vm8, %vm1377_vm5  ;;  %vm512_vm0 = vcmp.gt.f32.partialorder %v448_v7, %v1234_v22  ;;  %737 = vmatpush.msra.mxu3 %v706_v56 }
  0xa7   : > { %vm547_vm3 = vmand %vm531_vm13, %vm399_vm4  ;;  %964 = vmatpush.bf16.msk.msra.mxu0 %vm963_vm10, %v1102_v43  ;;  %vm524_vm5 = vcmp.eq.f32.partialorder %v1425_v10, %v1234_v22  ;;  %vm394_vm10 = vcmp.lt.s32.totalorder %v376_v20, %v1236_v23  ;;  %661 = vmatpush.msra.mxu1 %v630_v54 }
  0xa8   : > { %vm1434_vm15 = vmand %vm528_vm14, %vm396_vm11  ;;  %vm395_vm11 = vcmp.lt.s32.totalorder %v377_v14, %v1236_v23 }
  0xa9   : > { %vm1445_vm2 = vmor %vm515_vm12, %vm547_vm3 }
  0xaa   : > { %vm965_vm8 = vmpackc.low %vm1445_vm2, %vm1397_vm7 }
  0xab   : > { %vm1465_vm4 = vmor %vm512_vm0, %vm1434_vm15  ;;  %966 = vmatpush.bf16.msk.msra.mxu0 %vm965_vm8, %v1102_v43 }
  0xac   : > { %vm1476_vm12 = vmor %vm513_vm6, %vm1405_vm9 }
  0xad   : > { %vm1488_vm13 = vmand %vm524_vm5, %vm392_vm1  ;;  %v443_v30 = vpop.permute.xlu1 %442  ;;  %v438_v31 = vpop.permute.xlu0 %437  ;;  %vm508_vm5 = vcmp.gt.f32.partialorder %v1425_v10, %v1234_v22 }
  0xae   : > { %vm511_vm9 = vcmp.gt.f32.partialorder %v443_v30, %v1234_v22  ;;  %vm527_vm14 = vcmp.eq.f32.partialorder %v443_v30, %v1234_v22  ;;  %vm526_vm3 = vcmp.eq.f32.partialorder %v438_v31, %v1234_v22  ;;  %vm967_vm7 = vmpackc.low %vm1476_vm12, %vm1465_vm4  ;;  %vm510_vm15 = vcmp.gt.f32.partialorder %v438_v31, %v1234_v22 }
  0xaf   : > { %vm543_vm0 = vmand %vm527_vm14, %vm395_vm11  ;;  %968 = vmatpush.bf16.msk.msra.mxu0 %vm967_vm7, %v1102_v43  ;;  %vm393_vm4 = vcmp.lt.s32.totalorder %v375_v37, %v1236_v23  ;;  %v1103_v23 = vmov 1065369472  }
  0xb0   : > { %vm1513_vm6 = vmor %vm511_vm9, %vm543_vm0  ;;  %vm666_vm0 = vcmask 31744  }
  0xb1   : > { %vm542_vm2 = vmand %vm526_vm3, %vm394_vm10 }
  0xb2   : > { %vm558_vm1 = vmor %vm510_vm15, %vm542_vm2  ;;  %vm704_vm15 = vcmask 7168  }
  0xb3   : > { %vm969_vm8 = vmpackc.low %vm1513_vm6, %vm558_vm1  ;;  %vm742_vm6 = vcmask 121856  }
  0xb4   : > { %970 = vmatpush.bf16.msk.msra.mxu0 %vm969_vm8, %v1102_v43  ;;  %vm556_vm11 = vmor %vm508_vm5, %vm1488_vm13 }
  0xb5   : > { %v433_v42 = vpop.permute.xlu0 %432 }
  0xb6   : > { %vm509_vm12 = vcmp.gt.f32.partialorder %v433_v42, %v1234_v22  ;;  %vm525_vm9 = vcmp.eq.f32.partialorder %v433_v42, %v1234_v22  ;;  %v671_v22 = vld [vmem:[%s1296_s16 + $0x18] sm:$0xff] }
  0xb7   : > { %vm541_vm14 = vmand %vm525_vm9, %vm393_vm4  ;;  %696 = vmatpush.msra.mxu2 %v671_v22 }
  0xb8   : > { %vm557_vm10 = vmor %vm509_vm12, %vm541_vm14 }
  0xb9   : > { %vm971_vm3 = vmpackc.low %vm557_vm10, %vm556_vm11 }
  0xba   : > { %972 = vmatpush.bf16.msk.msra.mxu0 %vm971_vm3, %v1102_v43  ;;  %v670_v43 = vld [vmem:[%s1296_s16 + $0x10] sm:$0xff]  ;;  %s769_s16 = scalar_lea.hbm %s1598_s7, %s978_s22 }
  0xbb   : > { %697 = vmatpush.msra.mxu2 %v670_v43  ;;  %s773_s19 = sshll.u32 %s769_s16, 4  ;;  %s774_s19 = int_to_ptr.hbm [resolvable:$true] %s773_s19 }
  0xbc   : > { %s1051_s23 = sshra.s32 %s774_s19, 4  ;;  %s1052_s23 = int_to_ptr.hbm [resolvable:$true] %s1051_s23 }
  0xbd   : > { %620 = vmatmul.bf16.vlgmr.msra.gmra.mxu0 %v1103_v23  ;;  %698 = vmatpush.msra.mxu2 %v669_v52  ;;  %s1053_s22 = scalar_lea.hbm %s1052_s23, 8  ;;  %p1058_p0 = scmp.lt.s32.totalorder %s1052_s23, %s1598_s7 }
  0xbe   : > { %p1054_p11 = scmp.ne.s32.totalorder %s1052_s23, %s1053_s22  ;;  %p1059_p1 = scmp.lt.s32.totalorder %s1057_s0, %s1053_s22 }
  0xbf   : > { %699 = vmatpush.msra.mxu2 %v668_v55 }
  0xc0   : > { %p1055_p12 = pnand %p1054_p11, %p1183_p5  ;;  %p1060_p2 = por %p1059_p1, %p1058_p0 }
  0xc2   : > { %p1056_p13 = pneg %p1055_p12 }
  0xc4   : > { %p1061_p3 = pnand %p1060_p2, %p1056_p13 }
 0x13a   : > { %v621_v57 = vpop.f32.mrf.mxu0 }
 0x13b   : > { %vm985_vm13 = vcmp.lt.s32.totalorder %v621_v57, 0  ;;  %v986_v58 = vceil.f32 %v621_v57  ;;  %v987_v59 = vfloor.f32 %v621_v57 }
 0x13d   : > { %v988_v60 = vsel %vm985_vm13, %v986_v58, %v987_v59 }
 0x13e   : > { %v989_v61 = vcvt.f32.s32 %v988_v60 }
 0x140   : > { %v626_v62 = vperm.slane %v989_v61, 0 }
 0x142   : > { %v623_v63 = vpop.f32.mrf.mxu0  ;;  %vm627_vm7 = vcmp.eq.s32.totalorder %v626_v62, %v1226_v19 }
 0x143   : > { %974 = vmatmul.msk.f32.vlgmr.msra.gmra.mxu1 %vm627_vm7, %v1104_v0  ;;  %975 = vmatmul.msk.f32.vlgmr.msra.gmra.mxu2 %vm627_vm7, %v1104_v0 }
 0x144   : > { %976 = vmatmul.msk.f32.vlgmr.msra.gmra.mxu3 %vm627_vm7, %v1104_v0 }
 0x1c0   : > { %v663_v1 = vpop.f32.mrf.mxu1 }
 0x1c1   : > { %667 = vst.msk [vmem:[%s367_s8] sm:$0xff] %vm666_vm0, %v663_v1 }
 0x1c6   : > { %v701_v19 = vpop.f32.mrf.mxu2 }
 0x1c7   : > { %705 = vst.msk [vmem:[%s371_s13] sm:$0xff] %vm704_vm15, %v701_v19  ;;  %v739_v2 = vpop.f32.mrf.mxu3 }
 0x1c8   : > { %743 = vst.msk [vmem:[%s340_s17] sm:$0xff] %vm742_vm6, %v739_v2 }
 0x1c9   : > { %1064 = shalt.err (!%p1061_p3)
}
 0x1ca   : > { %990 = dma.vmem_to_hbm [thread:$0]  (%p1183_p5), %s772_s18, 128, %s774_s19, %s753_s28  }
 0x1cb PF: > { %p996_p4 = scmp.ge.s32.totalorder %s1099_s27, 2  ;;  %s799_s14 = sand.u32 1, %s1087_s24  }
 0x1cc   : > { %s800_s8 = scalar_lea.sflag [#allocation3], %s799_s14 }
 0x1cd   : > { %p993_p7 = pnand %p996_p4, %p1187_p6 }
 0x1cf   : > { %p994_p8 = pneg %p993_p7 }
 0x1d1   : > { %1082 = dma.done.wait (%p994_p8), %s800_s8, 128  }
 0x1d2   : > { %1084 = vsyncadd (%p994_p8), %s800_s8, 4294967168  ;;  %p18_p9 = scmp.ge.s32.totalorder %s1170_s30, 4   ;;  %s1641_s24 = smov %s1091_s25 }
 0x1d3   : > { %s1642_s25 = smov %s1095_s26  ;;  %s1643_s26 = smov %s1181_s10 }
 0x1d4   : > { %s1644_s27 = smov %s1170_s30  ;;  %20 = sbr.rel (!%p18_p9) target bundleno = 6 (0x6), region = 111 }
 0x1d9   :  { %806 = vsyncpa [#allocation3], 1 }
 0x1da   :  { %808 = vsyncpa [#allocation3 + $0x1], 1 }

</bundles_post_ra>
